<compile_context>
chip_gen: v6e
topology: v6e:2x2x1
jax: 0.10.0
libtpu: 0.0.40
codegen_flags: <defaults>
</compile_context>

<pallas_src>
import jax
import jax.numpy as jnp
from jax.experimental import pallas as pl
from jax.experimental.pallas import tpu as pltpu

LANE = 128


def _round_up(x, m):
    return (x + m - 1) // m * m


def gcn_kernel(seq_ref, adj_ref, w_ref, b_ref, alpha_ref, out_ref, fts_ref):
    # seq_ref:   (1, Np, in_ft)    bf16  (resident for the whole batch element)
    # adj_ref:   (1, TM, Np)       bf16  (one row tile of the adjacency)
    # w_ref:     (in_ft, out_ftp)  bf16  (transposed Linear weight, lane-padded)
    # b_ref:     (1, out_ftp)      f32
    # alpha_ref: (1, 1)            f32 in SMEM (PReLU slope)
    # out_ref:   (1, TM, out_ftp)  f32
    # fts_ref:   (Np, out_ftp)     bf16 VMEM scratch, shared across row tiles

    # Feature transform once per batch element (at row-tile 0 only).
    @pl.when(pl.program_id(1) == 0)
    def _():
        fts_ref[...] = jnp.dot(
            seq_ref[0], w_ref[...],
            preferred_element_type=jnp.float32).astype(fts_ref.dtype)

    # Row tile of adjacency @ features, accumulated in f32 on the MXU.
    out = jnp.dot(adj_ref[0], fts_ref[...],
                  preferred_element_type=jnp.float32)
    out = out + b_ref[...]                       # bias broadcast (f32)
    alpha = alpha_ref[0, 0]                      # scalar from SMEM
    out_ref[0] = jnp.where(out > 0, out, alpha * out)   # PReLU


def _vmem_bytes(tm, n_p, in_ft, out_ftp):
    return (2 * n_p * in_ft * 2          # seq (bf16, double-buffered)
            + 2 * tm * n_p * 2           # adj row tile (bf16, double-buffered)
            + 2 * in_ft * out_ftp * 2    # weight (bf16)
            + 2 * out_ftp * 4            # bias (f32)
            + 2 * tm * out_ftp * 4       # output tile (f32, double-buffered)
            + n_p * out_ftp * 2)         # fts scratch (bf16)


def gcn_forward(seq, adj, weight_t, bias, alpha, *, max_row_tile=512,
                vmem_budget=40 << 20):
    """seq: (B, N, in_ft), adj: (B, N, N), weight_t: (in_ft, out_ft),
    bias: (out_ft,), alpha: scalar PReLU slope. Returns (B, N, out_ft) f32."""
    B, N, in_ft = seq.shape
    out_ft = weight_t.shape[1]

    # Lane-dense output: pad out_ft to a multiple of 128.
    out_ftp = _round_up(out_ft, LANE)

    # Row tile sized against the VMEM budget (v7x-safe).
    tm = _round_up(min(max_row_tile, N), 8)
    while tm > 8 and _vmem_bytes(tm, _round_up(N, tm), in_ft, out_ftp) > vmem_budget:
        tm = max(8, _round_up(tm // 2, 8))
    n_p = _round_up(N, tm)

    # bf16 operands for the MXU / HBM traffic; zero-pad so padding contributes 0.
    seq_p = jnp.zeros((B, n_p, in_ft), jnp.bfloat16).at[:, :N, :].set(
        seq.astype(jnp.bfloat16))
    adj_p = jnp.zeros((B, n_p, n_p), jnp.bfloat16).at[:, :N, :N].set(
        adj.astype(jnp.bfloat16))
    w_p = jnp.zeros((in_ft, out_ftp), jnp.bfloat16).at[:, :out_ft].set(
        weight_t.astype(jnp.bfloat16))
    b_p = jnp.zeros((1, out_ftp), jnp.float32).at[0, :out_ft].set(
        bias.astype(jnp.float32))
    alpha_arr = jnp.full((1, 1), alpha, dtype=jnp.float32)

    grid = (B, n_p // tm)
    flops = 2 * B * n_p * in_ft * out_ftp + 2 * B * n_p * n_p * out_ftp
    bytes_accessed = (seq_p.size * 2 + adj_p.size * 2 + w_p.size * 2
                      + b_p.size * 4 + B * n_p * out_ftp * 4)
    vmem_limit = int(min(64 << 20,
                         max(16 << 20,
                             _vmem_bytes(tm, n_p, in_ft, out_ftp) + (8 << 20))))

    out_p = pl.pallas_call(
        gcn_kernel,
        out_shape=jax.ShapeDtypeStruct((B, n_p, out_ftp), jnp.float32),
        grid_spec=pltpu.PrefetchScalarGridSpec(
            num_scalar_prefetch=0,
            grid=grid,
            in_specs=[
                pl.BlockSpec((1, n_p, in_ft), lambda b, i: (b, 0, 0)),   # seq
                pl.BlockSpec((1, tm, n_p), lambda b, i: (b, i, 0)),      # adj tile
                pl.BlockSpec((in_ft, out_ftp), lambda b, i: (0, 0)),     # weight
                pl.BlockSpec((1, out_ftp), lambda b, i: (0, 0)),         # bias
                pl.BlockSpec(memory_space=pltpu.MemorySpace.SMEM),       # alpha
            ],
            out_specs=pl.BlockSpec((1, tm, out_ftp), lambda b, i: (b, i, 0)),
            scratch_shapes=[pltpu.VMEM((n_p, out_ftp), jnp.bfloat16)],
        ),
        compiler_params=pltpu.CompilerParams(
            dimension_semantics=("parallel", "arbitrary"),
            vmem_limit_bytes=vmem_limit),
        cost_estimate=pl.CostEstimate(
            flops=flops, transcendentals=0, bytes_accessed=bytes_accessed),
    )(seq_p, adj_p, w_p, b_p, alpha_arr)

    return out_p[:, :N, :out_ft]


if __name__ == "__main__":
    key = jax.random.PRNGKey(0)
    B, N, in_ft, out_ft = 2, 16, 32, 32

    k_seq, k_adj, k_w = jax.random.split(key, 3)

    # inputs
    seq = jax.random.normal(k_seq, (B, N, in_ft), dtype=jnp.float32)
    adj_raw = jax.random.uniform(k_adj, (B, N, N), dtype=jnp.float32)
    adj = adj_raw / jnp.sum(adj_raw, axis=-1, keepdims=True)   # row-normalized adjacency

    # parameters (deterministic, mirror torch init)
    # nn.Linear weight: (out_ft, in_ft), xavier_uniform_
    bound = (6.0 / (in_ft + out_ft)) ** 0.5
    w = jax.random.uniform(k_w, (out_ft, in_ft), dtype=jnp.float32,
                           minval=-bound, maxval=bound)
    weight_t = w.T                                    # (in_ft, out_ft)
    bias = jnp.zeros((out_ft,), dtype=jnp.float32)    # bias.data.fill_(0.0)
    alpha = 0.25                                      # nn.PReLU default init

    out = gcn_forward(seq, adj, weight_t, bias, alpha)
    jax.block_until_ready(out)

    # reference check (plain fp32 JAX); kernel uses bf16 operands -> loose tol
    ref = jnp.matmul(adj, jnp.matmul(seq, weight_t)) + bias
    ref = jnp.where(ref > 0, ref, alpha * ref)
    assert out.shape == ref.shape
    assert jnp.allclose(out, ref, atol=5e-2, rtol=5e-2)

    # TODO(synk): the torch `sparse=True` path (torch.spmm) is not implemented;
    # only the dense adjacency forward is translated.
    print("KERNEL_OK")
</pallas_src>

<mosaic_0001>
module attributes {stable_mosaic.version = 11 : i64} {
  func.func @gcn_kernel(%arg0: i32, %arg1: i32, %arg2: memref<1x16x32xbf16, #tpu.memory_space<vmem>>, %arg3: memref<1x16x16xbf16, #tpu.memory_space<vmem>>, %arg4: memref<32x128xbf16, #tpu.memory_space<vmem>>, %arg5: memref<1x128xf32, #tpu.memory_space<vmem>>, %arg6: memref<1x1xf32, #tpu.memory_space<smem>>, %arg7: memref<1x16x128xf32, #tpu.memory_space<vmem>>, %arg8: memref<16x128xbf16, #tpu.memory_space<vmem>>) attributes {dimension_semantics = [#tpu.dimension_semantics<parallel>, #tpu.dimension_semantics<arbitrary>], iteration_bounds = array<i64: 2, 1>, scalar_prefetch = 0 : i64, scratch_operands = 1 : i64, tpu.core_type = #tpu.core_type<tc>, window_params = [{transform_indices = @transform_0, window_bounds = array<i64: 1, 16, 32>}, {transform_indices = @transform_1, window_bounds = array<i64: 1, 16, 16>}, {pipeline_mode = #tpu.pipeline_mode<synchronous>, transform_indices = @transform_2, window_bounds = array<i64: 32, 128>}, {pipeline_mode = #tpu.pipeline_mode<synchronous>, transform_indices = @transform_3, window_bounds = array<i64: 1, 128>}, {transform_indices = @transform_4, window_bounds = array<i64: 1, 1>}, {transform_indices = @transform_5, window_bounds = array<i64: 1, 16, 128>}]} {
    %c0_i32 = arith.constant 0 : i32
    %0 = arith.cmpi eq, %arg1, %c0_i32 : i32
    %1 = arith.extui %0 : i1 to i32
    %c0_i32_0 = arith.constant 0 : i32
    %2 = arith.cmpi ne, %1, %c0_i32_0 : i32
    scf.if %2 {
      %c0_13 = arith.constant 0 : index
      %c0_14 = arith.constant 0 : index
      %c0_15 = arith.constant 0 : index
      %19 = vector.load %arg2[%c0_13, %c0_14, %c0_15] : memref<1x16x32xbf16, #tpu.memory_space<vmem>>, vector<1x16x32xbf16>
      %20 = vector.shape_cast %19 : vector<1x16x32xbf16> to vector<16x32xbf16>
      %c0_16 = arith.constant 0 : index
      %c0_17 = arith.constant 0 : index
      %21 = vector.load %arg4[%c0_16, %c0_17] : memref<32x128xbf16, #tpu.memory_space<vmem>>, vector<32x128xbf16>
      %cst_18 = arith.constant dense<0.000000e+00> : vector<16x128xf32>
      %22 = tpu.matmul %20, %21, %cst_18 {dimension_numbers = #tpu.dot_dimension_numbers<[1], [0], [0], [1], [0, 0, 1, 1], [], []>} : vector<16x32xbf16>, vector<32x128xbf16>, vector<16x128xf32> -> vector<16x128xf32>
      %23 = arith.truncf %22 : vector<16x128xf32> to vector<16x128xbf16>
      %c0_19 = arith.constant 0 : index
      %c0_20 = arith.constant 0 : index
      %24 = vector.load %arg8[%c0_19, %c0_20] : memref<16x128xbf16, #tpu.memory_space<vmem>>, vector<16x128xbf16>
      tpu.vector_store %arg8[%c0_19, %c0_20], %23 {strides = array<i32>} : memref<16x128xbf16, #tpu.memory_space<vmem>>, vector<16x128xbf16>,
    } else {
    }
    %c0 = arith.constant 0 : index
    %c0_1 = arith.constant 0 : index
    %c0_2 = arith.constant 0 : index
    %3 = vector.load %arg3[%c0, %c0_1, %c0_2] : memref<1x16x16xbf16, #tpu.memory_space<vmem>>, vector<1x16x16xbf16>
    %4 = vector.shape_cast %3 : vector<1x16x16xbf16> to vector<16x16xbf16>
    %c0_3 = arith.constant 0 : index
    %c0_4 = arith.constant 0 : index
    %5 = vector.load %arg8[%c0_3, %c0_4] : memref<16x128xbf16, #tpu.memory_space<vmem>>, vector<16x128xbf16>
    %cst = arith.constant dense<0.000000e+00> : vector<16x128xf32>
    %6 = tpu.matmul %4, %5, %cst {dimension_numbers = #tpu.dot_dimension_numbers<[1], [0], [0], [1], [0, 0, 1, 1], [], []>} : vector<16x16xbf16>, vector<16x128xbf16>, vector<16x128xf32> -> vector<16x128xf32>
    %c0_5 = arith.constant 0 : index
    %c0_6 = arith.constant 0 : index
    %7 = vector.load %arg5[%c0_5, %c0_6] : memref<1x128xf32, #tpu.memory_space<vmem>>, vector<1x128xf32>
    %8 = vector.broadcast %7 : vector<1x128xf32> to vector<16x128xf32>
    %9 = arith.addf %6, %8 : vector<16x128xf32>
    %c0_7 = arith.constant 0 : index
    %c0_8 = arith.constant 0 : index
    %10 = memref.load %arg6[%c0_7, %c0_8] : memref<1x1xf32, #tpu.memory_space<smem>>
    %cst_9 = arith.constant 0.000000e+00 : f32
    %11 = vector.broadcast %cst_9 : f32 to vector<16x128xf32>
    %12 = arith.cmpf ogt, %9, %11 : vector<16x128xf32>
    %13 = vector.broadcast %10 : f32 to vector<16x128xf32>
    %14 = arith.mulf %13, %9 : vector<16x128xf32>
    %15 = arith.select %12, %9, %14 : vector<16x128xi1>, vector<16x128xf32>
    %c0_10 = arith.constant 0 : index
    %c0_11 = arith.constant 0 : index
    %c0_12 = arith.constant 0 : index
    %16 = vector.load %arg7[%c0_10, %c0_11, %c0_12] : memref<1x16x128xf32, #tpu.memory_space<vmem>>, vector<1x16x128xf32>
    %17 = vector.shape_cast %16 : vector<1x16x128xf32> to vector<16x128xf32>
    %18 = vector.shape_cast %15 : vector<16x128xf32> to vector<1x16x128xf32>
    tpu.vector_store %arg7[%c0_10, %c0_11, %c0_12], %18 {strides = array<i32>} : memref<1x16x128xf32, #tpu.memory_space<vmem>>, vector<1x16x128xf32>,
    return
  }
  func.func @transform_0(%arg0: i32, %arg1: i32) -> (i32, i32, i32) {
    %c0_i32 = arith.constant 0 : i32
    %c0_i32_0 = arith.constant 0 : i32
    %c0_i32_1 = arith.constant 0 : i32
    return %arg0, %c0_i32, %c0_i32_0 : i32, i32, i32
  }
  func.func @transform_1(%arg0: i32, %arg1: i32) -> (i32, i32, i32) {
    %c0_i32 = arith.constant 0 : i32
    %c0_i32_0 = arith.constant 0 : i32
    return %arg0, %arg1, %c0_i32 : i32, i32, i32
  }
  func.func @transform_2(%arg0: i32, %arg1: i32) -> (i32, i32) {
    %c0_i32 = arith.constant 0 : i32
    %c0_i32_0 = arith.constant 0 : i32
    %c0_i32_1 = arith.constant 0 : i32
    return %c0_i32, %c0_i32_0 : i32, i32
  }
  func.func @transform_3(%arg0: i32, %arg1: i32) -> (i32, i32) {
    %c0_i32 = arith.constant 0 : i32
    %c0_i32_0 = arith.constant 0 : i32
    %c0_i32_1 = arith.constant 0 : i32
    return %c0_i32, %c0_i32_0 : i32, i32
  }
  func.func @transform_4(%arg0: i32, %arg1: i32) -> (i32, i32) {
    %c0_i32 = arith.constant 0 : i32
    %c0_i32_0 = arith.constant 0 : i32
    %c0_i32_1 = arith.constant 0 : i32
    return %c0_i32, %c0_i32_0 : i32, i32
  }
  func.func @transform_5(%arg0: i32, %arg1: i32) -> (i32, i32, i32) {
    %c0_i32 = arith.constant 0 : i32
    %c0_i32_0 = arith.constant 0 : i32
    return %arg0, %arg1, %c0_i32 : i32, i32, i32
  }
}

</mosaic_0001>

<bundles_post_ra>
// kernel: tpu_custom_call.1
= control target key start
LH: loop header
LB: loop body
LE: loop exit
PB: predicated region body
PF: predicated region fallthrough
CT: control target
= control target key end

     0   :  { %s1187_s0 = inlined_call_operand.hbm [shape: bf16[2,16,32], index: 0, kind: input, shape index: {}]   ;;  %s1188_s1 = inlined_call_operand.hbm [shape: bf16[2,16,16], index: 1, kind: input, shape index: {}]   ;;  %s1189_s2 = inlined_call_operand.hbm [shape: bf16[32,128], index: 2, kind: input, shape index: {}]   ;;  %s1190_s3 = inlined_call_operand.vmem [shape: f32[1,128], index: 3, kind: input, shape index: {}]   ;;  %s1191_s4 = inlined_call_operand.<no memory space> [shape: f32[1,1], index: 4, kind: input, shape index: {}]   ;;  %s1192_s5 = inlined_call_operand.hbm [shape: f32[2,16,128], index: 5, kind: output, shape index: {}]  }
   0x1   :  { %1199 = sst [smem:[#allocation17_spill]] %s1189_s2 }
   0x2   :  { %10 = sst [smem:[#allocation3]] %s1191_s4 }
   0x3   :  { %11 = vsyncpa [#allocation5], 0 }
   0x4   :  { %13 = vsyncpa [#allocation5 + $0x1], 0 }
   0x5   :  { %14 = vsyncpa [#allocation8], 0 }
   0x6   :  { %16 = vsyncpa [#allocation8 + $0x1], 0 }
   0x7   :  { %17 = vsyncpa [#allocation6], 0 }
   0x8   :  { %19 = vsyncpa [#allocation6 + $0x1], 0  ;;  %s977_s20 = smov 0   ;;  %s979_s21 = smov 0  }
   0x9   :  { %s981_s22 = smov 0   ;;  %s983_s23 = smov 0  }
   0xa   :  { %s985_s24 = smov 0   ;;  %s987_s25 = smov 0  }
   0xb LB: > { %1200 = sst [smem:[#allocation15_spill]] %s928_s24  ;;  %s1008_s4 = sadd.s32 4294967295, %s932_s25   ;;  %s932_s25 = sphi %s987_s25, %s25_s25   ;;  %s928_s24 = sphi %s985_s24, %s1216_s24   ;;  %s924_s23 = sphi %s983_s23, %s1215_s23   ;;  %s920_s22 = sphi %s981_s22, %s1219_s22   ;;  %s916_s21 = sphi %s979_s21, %s1218_s21   ;;  %s912_s20 = sphi %s977_s20, %s1217_s20  }
   0xc   : > { %s614_s26 = sadd.s32 4294967294, %s932_s25   ;;  %p57_p0 = scmp.ne.s32.totalorder %s916_s21, %s912_s20 }
   0xd   : > { %p58_p1 = scmp.eq.s32.totalorder %s1008_s4, 0  ;;  %p180_p3 = scmp.eq.s32.totalorder %s614_s26, 1 }
   0xe   : > { %p615_p5 = scmp.ge.s32.totalorder %s932_s25, 1  ;;  %p187_p7 = scmp.lt.s32.totalorder %s932_s25, 3 }
   0xf   : > { %p1017_p4 = por %p58_p1, %p57_p0  ;;  %p1022_p6 = por %p180_p3, %p57_p0 }
  0x10   : > { %p1027_p8 = pnand %p615_p5, %p187_p7  ;;  %s934_s30 = smov [#allocation9]  }
  0x11   : > { %s1202_s28 = scalar_select %p1022_p6, 1, 0 }
  0x12   : > { %s199_s6 = sshll.u32 %s934_s30, 4  ;;  %p683_p9 = pneg %p1027_p8  ;;  %s200_s6 = int_to_ptr.vmem [resolvable:$true] %s199_s6 }
  0x13   : > { %s37_s8 = sadd.s32 1, %s928_s24  ;;  %s773_s9 = scalar_lea.vmem %s200_s6, 256 }
  0x14   : > { %p1036_p11 = pnand %p683_p9, %p58_p1  ;;  %p774_p13 = scmp.ne.s32.totalorder %s200_s6, %s773_s9 }
  0x15   : > { %p781_p5 = scmp.lt.s32.totalorder %s200_s6, %s200_s6  ;;  %p782_p7 = scmp.lt.s32.totalorder %s773_s9, %s773_s9 }
  0x16   : > { %p764_p12 = pneg %p1036_p11 }
  0x17   : > { %p783_p2 = por %p782_p7, %p781_p5 }
  0x18   : > { %p776_p0 = pnand %p774_p13, %p764_p12 }
  0x1a   : > { %p777_p3 = pneg %p776_p0 }
  0x1c   : > { %p784_p6 = pnand %p783_p2, %p777_p3 }
  0x1e   : > { %787 = shalt.err (!%p784_p6)
}
  0x1f   : > { %s1193_s10 = smov 64   ;;  %s1195_s11 = smov 4  }
  0x20   : > { %s1205_s2 = sld [smem:[#allocation17_spill]]  ;;  %p39_p2 = scmp.ge.s32.totalorder %s37_s8, 2 }
  0x21   : > { %s44_s14 = sadd.s32 1, %s920_s22  ;;  %p51_p6 = scmp.ne.s32.totalorder %s920_s22, %s916_s21 }
  0x22   : > { %p52_p9 = scmp.eq.s32.totalorder %s932_s25, 0  ;;  %s1221_s8 = smov (%p39_p2, %s37_s8), 0 }
  0x23   : > { %1206 = sst [smem:[#allocation16_spill]] %s1221_s8  ;;  %p1208_p13 = scmp.eq.s32.totalorder %s1008_s4, 1 }
  0x24   : > { %p1057_p12 = por %p52_p9, %p51_p6  ;;  %s41_s17 = ssub.s32 %s928_s24, %s1221_s8 }
  0x25   : > { %p1063_p0 = por %p1208_p13, %p51_p6  ;;  %p699_p3 = scmp.lt.s32.totalorder %s932_s25, 2 }
  0x26   : > { %686 = dma.hbm_to_vmem [thread:$0]  (!%p1036_p11), %s1205_s2, 256, %s200_s6, [#allocation8], %s1193_s10, %s1193_s10, %s1195_s11  }
  0x27   : > { %p42_p11 = scmp.eq.s32.totalorder %s41_s17, 0  ;;  %s219_s18 = sand.u32 1, %s920_s22  }
  0x28   : > { %s618_s19 = sshll.u32 %s219_s18, 3  ;;  %s644_s30 = sshll.u32 %s928_s24, 7 }
  0x29   : > { %s1072_s26 = scalar_select %p42_p11, %s920_s22, %s44_s14  }
  0x2a   : > { %s229_s9 = scalar_lea.hbm %s1187_s0, %s644_s30  ;;  %s223_s12 = scalar_lea.vmem [#allocation4], %s618_s19 }
  0x2b   : > { %s230_s13 = sshll.u32 %s223_s12, 4  ;;  %p1080_p5 = pnand %p699_p3, %p1057_p12  ;;  %s231_s13 = int_to_ptr.vmem [resolvable:$true] %s230_s13 }
  0x2c   : > { %s1087_s14 = scalar_lea.hbm %s1188_s1, %s644_s30  ;;  %s244_s17 = scalar_lea.vmem [#allocation7], %s618_s19 }
  0x2d   : > { %s253_s8 = sshll.u32 %s244_s17, 4  ;;  %s220_s24 = scalar_lea.sflag [#allocation5], %s219_s18  ;;  %s254_s8 = int_to_ptr.vmem [resolvable:$true] %s253_s8 }
  0x2e   : > { %p790_p7 = pneg %p1080_p5  ;;  %s801_s6 = scalar_lea.vmem %s231_s13, 128 }
  0x2f   : > { %p802_p2 = scmp.ne.s32.totalorder %s231_s13, %s801_s6  ;;  %s937_s15 = smov [#allocation4]  }
  0x30   : > { %s806_s7 = sshll.u32 %s937_s15, 4  ;;  %s807_s7 = int_to_ptr.vmem [resolvable:$false] %s806_s7 }
  0x31   : > { %p804_p6 = pnand %p802_p2, %p790_p7  ;;  %s808_s12 = scalar_lea.vmem %s807_s7, 256 }
  0x32   : > { %p809_p12 = scmp.lt.s32.totalorder %s231_s13, %s807_s7  ;;  %p810_p13 = scmp.lt.s32.totalorder %s808_s12, %s801_s6 }
  0x33   : > { %p805_p9 = pneg %p804_p6 }
  0x34   : > { %p811_p3 = por %p810_p13, %p809_p12 }
  0x36   : > { %p812_p11 = pnand %p811_p3, %p805_p9 }
  0x38   : > { %815 = shalt.err (!%p812_p11)
}
  0x39   : > { %s1211_s2 = smov 4   ;;  %s1212_s11 = smov 64  }
  0x3a   : > { %690 = dma.hbm_to_vmem [thread:$0]  (!%p1080_p5), %s229_s9, 128, %s231_s13, %s220_s24, %s1212_s11, %s1212_s11, %s1211_s2  }
  0x3b   : > { %s240_s18 = sand.u32 1, %s932_s25   ;;  %s829_s30 = scalar_lea.vmem %s254_s8, 128 }
  0x3c   : > { %s241_s19 = scalar_lea.sflag [#allocation8], %s240_s18  ;;  %p830_p2 = scmp.ne.s32.totalorder %s254_s8, %s829_s30 }
  0x3d   : > { %s938_s17 = smov [#allocation7]  }
  0x3e   : > { %p832_p6 = pnand %p830_p2, %p790_p7  ;;  %s834_s6 = sshll.u32 %s938_s17, 4  ;;  %s835_s6 = int_to_ptr.vmem [resolvable:$false] %s834_s6 }
  0x3f   : > { %s836_s15 = scalar_lea.vmem %s835_s6, 256  ;;  %p837_p9 = scmp.lt.s32.totalorder %s254_s8, %s835_s6 }
  0x40   : > { %p833_p10 = pneg %p832_p6  ;;  %p838_p12 = scmp.lt.s32.totalorder %s836_s15, %s829_s30 }
  0x42   : > { %p839_p13 = por %p838_p12, %p837_p9 }
  0x44   : > { %p840_p3 = pnand %p839_p13, %p833_p10 }
  0x46   : > { %843 = shalt.err (!%p840_p3)
}
  0x47   : > { %693 = dma.hbm_to_vmem [thread:$0]  (!%p1080_p5), %s1087_s14, 128, %s254_s8, %s241_s19, %s1212_s11, %s1212_s11, %s1211_s2  }
  0x48   : > { %265 = sbr.rel (%p1027_p8) target bundleno = 519 (0x207), region = 40  ;;  %s1112_s24 = sand.u32 (!%p1027_p8), 1, %s916_s21  }
  0x49   : > { %s625_s9 = sshll.u32 (!%p1027_p8), %s1112_s24, 3  ;;  %s268_s13 = scalar_lea.sflag (!%p1027_p8), [#allocation5], %s1112_s24 }
  0x4a   : > { %s271_s7 = scalar_lea.vmem (!%p1027_p8), [#allocation4], %s625_s9 }
  0x4d   : > { %895 = dma.done.wait (%p1017_p4), %s268_s13, 128  }
  0x4e   : > { %897 = vsyncadd (%p1017_p4), %s268_s13, 4294967168  ;;  %s276_s8 = sand.u32 1, %s1008_s4   ;;  %s280_s29 = scalar_lea.vmem [#allocation7], %s625_s9 }
  0x4f   : > { %s277_s10 = scalar_lea.sflag [#allocation8], %s276_s8 }
  0x50   : > { %899 = dma.done.wait (%p1017_p4), %s277_s10, 128  }
  0x51   : > { %901 = vsyncadd (%p1017_p4), %s277_s10, 4294967168 }
  0x52   : > { %903 = dma.done.wait (%p58_p1), [#allocation8], 256  }
  0x53   : > { %905 = vsyncadd (%p58_p1), [#allocation8], 4294967040  ;;  %v939_v0 = vmov 0.0   ;;  %vm940_vm0 = vmmov 0   ;;  %v757_v1 = vld [vmem:[#allocation9 + $0x8] sm:$0xff]   ;;  %v758_v2 = vld [vmem:[#allocation9] sm:$0xff]  }
  0x54   : > { %659 = vmatprep.subr.bf16.mxu0 %v939_v0  ;;  %663 = vmatprep.mubr.msk.bf16.mxu0 %vm940_vm0, %v939_v0  ;;  %v759_v3 = vld [vmem:[%s271_s7] sm:$0xff]   ;;  %vm346_vm1 = vcmask 261120   ;;  %v761_v10 = vld [vmem:[%s280_s29] sm:$0xff]   ;;  %vm423_vm2 = vcmask 130048   ;;  %s468_s4 = sld [smem:[#allocation3]]  ;;  %s628_s12 = sshll.u32 %s1112_s24, 4 }
  0x55   : > { %667 = vmatprep.subr.bf16.mxu1 %v939_v0  ;;  %669 = vmatprep.mubr.msk.bf16.mxu1 %vm940_vm0, %v939_v0  ;;  %v635_v11 = vld [vmem:[%s1190_s3] ss:$0 sm:$0xff]  ;;  %s315_s2 = scalar_lea.vmem [#allocation10], %s628_s12  ;;  %s648_s18 = sshll.u32 %s924_s23, 8 }
  0x56   : > { %660 = vmatpush3.bf16.msra.mxu0 %v757_v1  ;;  %s494_s11 = sshll.u32 %s315_s2, 4  ;;  %s1139_s17 = scalar_lea.hbm %s1192_s5, %s648_s18  ;;  %s1134_s11 = int_to_ptr.vmem [resolvable:$true] %s494_s11 }
  0x57   : > { %661 = vmatprep.subr.bf16.mxu0 %v939_v0  ;;  %s479_s6 = scalar_lea.sflag [#allocation6], %s1112_s24  ;;  %s844_s23 = scalar_lea.vmem %s1134_s11, 256 }
  0x58   : > { %p845_p1 = scmp.ne.s32.totalorder %s1134_s11, %s844_s23  ;;  %s941_s15 = smov [#allocation10]  }
  0x59   : > { %s848_s9 = sshll.u32 %s941_s15, 4  ;;  %s849_s9 = int_to_ptr.vmem [resolvable:$false] %s848_s9 }
  0x5a   : > { %662 = vmatpush3.bf16.msra.mxu0 %v758_v2  ;;  %v471_v13 = vstv %s468_s4  ;;  %p846_p4 = pnand %p845_p1, %p1063_p0  ;;  %s850_s13 = scalar_lea.vmem %s849_s9, 512 }
  0x5b   : > { %p851_p10 = scmp.lt.s32.totalorder %s1134_s11, %s849_s9  ;;  %p852_p5 = scmp.lt.s32.totalorder %s850_s13, %s844_s23 }
  0x5c   : > { %p847_p8 = pneg %p846_p4 }
  0x5d   : > { %664 = vmatmul.mubr.msk.bf16.vlgmr.msra.gmra.mxu0 %vm346_vm1, %v759_v3  ;;  %p853_p7 = por %p852_p5, %p851_p10 }
  0x5f   : > { %p854_p11 = pnand %p853_p7, %p847_p8 }
 0x11d   : > { %v384_v4 = vpop.f32.mrf.mxu0 }
 0x11f   : > { %v665_v5 = vpop.f32.mrf.mxu0 }
 0x121   : > { %v387_v6 = vpop.f32.mrf.mxu0 }
 0x122   : > { %v652_v7 = vpack.c.bf16 %v387_v6, %v384_v4 }
 0x123   : > { %v666_v8 = vpop.f32.mrf.mxu0 }
 0x124   : > { %653 = vst [vmem:[#allocation2] sm:$0xff] %v652_v7  }
 0x12b   : > { %v760_v9 = vld [vmem:[#allocation2] sm:$0xff]  }
 0x12c   : > { %668 = vmatpush3.bf16.msra.mxu1 %v760_v9 }
 0x12f   : > { %670 = vmatmul.mubr.msk.bf16.vlgmr.msra.gmra.mxu1 %vm423_vm2, %v761_v10 }
 0x1ef   : > { %v461_v12 = vpop.f32.mrf.mxu1 }
 0x1f0   : > { %v462_v14 = vadd.f32 %v635_v11, %v461_v12 }
 0x1f1   : > { %v671_v15 = vpop.f32.mrf.mxu1 }
 0x1f2   : > { %vm469_vm3 = vcmp.gt.f32.partialorder %v462_v14, 0.0  ;;  %v472_v16 = vmul.f32 %v471_v13, %v462_v14 }
 0x1f3   : > { %v464_v17 = vpop.f32.mrf.mxu1 }
 0x1f4   : > { %v474_v18 = vsel %vm469_vm3, %v462_v14, %v472_v16  ;;  %v465_v19 = vadd.f32 %v635_v11, %v464_v17 }
 0x1f5   : > { %476 = vst [vmem:[%s315_s2] sm:$0xff] %v474_v18  ;;  %v672_v20 = vpop.f32.mrf.mxu1 }
 0x1f6   : > { %vm470_vm4 = vcmp.gt.f32.partialorder %v465_v19, 0.0  ;;  %v473_v21 = vmul.f32 %v471_v13, %v465_v19 }
 0x1f8   : > { %v475_v22 = vsel %vm470_vm4, %v465_v19, %v473_v21 }
 0x1f9   : > { %477 = vst [vmem:[%s315_s2 + $0x8] sm:$0xff] %v475_v22 }
 0x1fa   : > { %857 = shalt.err (!%p854_p11)
}
 0x1fb   : > { %s858_s7 = scalar_lea.hbm %s1139_s17, 256  ;;  %s862_s29 = scalar_lea.hbm %s1192_s5, 512 }
 0x1fc   : > { %p859_p2 = scmp.ne.s32.totalorder %s1139_s17, %s858_s7  ;;  %p863_p12 = scmp.lt.s32.totalorder %s1139_s17, %s1192_s5 }
 0x1fd   : > { %p864_p13 = scmp.lt.s32.totalorder %s862_s29, %s858_s7 }
 0x1fe   : > { %p860_p6 = pnand %p859_p2, %p1063_p0 }
 0x1ff   : > { %p865_p3 = por %p864_p13, %p863_p12 }
 0x200   : > { %p861_p9 = pneg %p860_p6 }
 0x202   : > { %p866_p1 = pnand %p865_p3, %p861_p9 }
 0x204   : > { %869 = shalt.err (!%p866_p1)
}
 0x205   : > { %s942_s14 = smov 128   ;;  %s943_s12 = smov 8  }
 0x206   : > { %681 = dma.vmem_to_hbm [thread:$0]  (%p1063_p0), %s1134_s11, 256, %s1139_s17, %s479_s6, %s942_s14, %s942_s14, %s943_s12  }
 0x207 PF: > { %s509_s2 = sand.u32 1, %s912_s20   ;;  %p1213_p4 = scmp.ne.s32.totalorder %s1202_s28, 0 }
 0x208   : > { %p1214_p8 = scmp.ge.s32.totalorder %s932_s25, 2  ;;  %s510_s18 = scalar_lea.sflag [#allocation6], %s509_s2 }
 0x20a   : > { %p695_p10 = pnand %p1214_p8, %p1213_p4 }
 0x20c   : > { %p696_p5 = pneg %p695_p10 }
 0x20e   : > { %907 = dma.done.wait (%p696_p5), %s510_s18, 256  }
 0x20f   : > { %909 = vsyncadd (%p696_p5), %s510_s18, 4294967040  ;;  %s25_s25 = sadd.s32 1, %s932_s25   ;;  %s1215_s23 = sld [smem:[#allocation15_spill]] }
 0x210   : > { %p22_p7 = scmp.ge.s32.totalorder %s25_s25, 4   ;;  %s1216_s24 = sld [smem:[#allocation16_spill]] }
 0x211   : > { %s1217_s20 = smov %s916_s21  ;;  %s1218_s21 = smov %s920_s22 }
 0x212   : > { %s1219_s22 = smov %s1072_s26  ;;  %24 = sbr.rel (!%p22_p7) target bundleno = 11 (0xb), region = 106 }
 0x217   :  { %515 = vsyncpa [#allocation5], 1 }
 0x218   :  { %517 = vsyncpa [#allocation5 + $0x1], 1 }
 0x219   :  { %518 = vsyncpa [#allocation8], 1 }
 0x21a   :  { %520 = vsyncpa [#allocation8 + $0x1], 1 }
 0x21b   :  { %521 = vsyncpa [#allocation6], 1 }
 0x21c   :  { %523 = vsyncpa [#allocation6 + $0x1], 1 }

</bundles_post_ra>
